<compile_context>
chip_gen: v6e
topology: v6e:2x2x1
jax: 0.10.0
libtpu: 0.0.40
codegen_flags: <defaults>
</compile_context>

<pallas_src>
import math
import functools

import jax
import jax.numpy as jnp
from jax.experimental import pallas as pl
from jax.experimental.pallas import tpu as pltpu


def _round_up(x, m):
    return ((x + m - 1) // m) * m


def _pos_w_linear_kernel(x_ref, w_ref, b_ref, o_ref, acc_ref):
    # x_ref: (tm, tk) bf16, w_ref: (tk, tn) bf16 (already |W|^T),
    # b_ref: (1, tn) f32, o_ref: (tm, tn) out dtype,
    # acc_ref: (tm, tn) f32 scratch resident across the k axis.
    k = pl.program_id(2)

    @pl.when(k == 0)
    def _():
        # Fold the bias into the accumulator init (broadcast (1, tn) over rows).
        acc_ref[...] = jnp.broadcast_to(
            b_ref[...].astype(jnp.float32), acc_ref.shape)

    # bf16 x bf16 -> f32 accumulate on the MXU.  Keep the += form: on v7x the
    # MRB accumulates in place, on v5e/v6e large tk amortizes the acc RMW.
    acc_ref[...] += jnp.dot(x_ref[...], w_ref[...],
                            preferred_element_type=jnp.float32)

    @pl.when(k == pl.num_programs(2) - 1)
    def _():
        o_ref[...] = acc_ref[...].astype(o_ref.dtype)


@functools.partial(jax.jit, static_argnames=("tm", "tn", "tk"))
def pos_w_linear(x, weight, bias, *, tm=512, tn=1024, tk=1024):
    """y = x @ |W|^T + b   (F.linear with abs(weight)).

    x: (B, IN)   weight: (OUT, IN)   bias: (OUT,)   ->   (B, OUT)
    """
    B, IN = x.shape
    OUT, IN_w = weight.shape
    assert IN == IN_w, (IN, IN_w)
    out_dtype = x.dtype

    # Tiny / badly-aligned problems: pad copies + pallas_call fixed overhead
    # dominate; XLA's native dot is strictly faster on all three generations.
    if (B * IN * OUT < (1 << 21)) or OUT < 128 or IN < 128:
        return (x @ jnp.abs(weight).T.astype(x.dtype) + bias).astype(out_dtype)

    # Single fused HBM pass over W: abs + transpose + bf16 cast (one XLA op).
    # The transpose is free given the cast pass bf16 needs anyway; output
    # stores end up lane-dense over OUT.
    wt = jnp.abs(weight).T.astype(jnp.bfloat16)      # (IN, OUT)
    xb = x.astype(jnp.bfloat16)

    # Clamp tiles to the (padded) problem; keep bf16-friendly (16, 128) granularity.
    SUB = 16
    tm = min(tm, _round_up(B, SUB))
    tn = min(tn, _round_up(OUT, 128))
    tk = min(tk, _round_up(IN, 128))

    Mp = _round_up(B, tm)
    # v7x: if M only has one tile, give N at least two so both TCs get work.
    if Mp // tm == 1 and OUT > 128:
        tn = min(tn, _round_up((OUT + 1) // 2, 128))
    Np = _round_up(OUT, tn)
    Kp = _round_up(IN, tk)

    # Zero padding is semantically safe: |0| = 0 contributes nothing to the
    # reduction, and padded output rows/cols are sliced off below.
    x_p = xb if (Mp == B and Kp == IN) else jnp.pad(xb, ((0, Mp - B), (0, Kp - IN)))
    wt_p = wt if (Kp == IN and Np == OUT) else jnp.pad(wt, ((0, Kp - IN), (0, Np - OUT)))
    b_p = bias if Np == OUT else jnp.pad(bias, (0, Np - OUT))
    b2 = b_p.astype(jnp.float32).reshape(1, Np)

    grid = (Mp // tm, Np // tn, Kp // tk)

    # VMEM budget: double-buffered x/W/out tiles + f32 acc + bias, with headroom.
    # Capped at 48 MiB so it always fits v7x's 64 MiB physical VMEM; the 32 MiB
    # floor overrides v5e's 16 MiB scoped default.
    out_itemsize = jnp.dtype(out_dtype).itemsize
    footprint = (2 * tm * tk * 2            # x tiles (bf16)
                 + 2 * tk * tn * 2          # |W|^T tiles (bf16)
                 + 2 * tm * tn * out_itemsize
                 + tm * tn * 4              # acc scratch
                 + 2 * tn * 4)              # bias tiles
    vmem_limit = min(48 << 20, max(32 << 20, footprint + (4 << 20)))

    cost = pl.CostEstimate(
        flops=2 * B * IN * OUT,
        transcendentals=0,
        bytes_accessed=(x_p.size * x_p.dtype.itemsize
                        + wt_p.size * wt_p.dtype.itemsize
                        + b2.size * b2.dtype.itemsize
                        + Mp * Np * out_itemsize),
    )

    out_p = pl.pallas_call(
        _pos_w_linear_kernel,
        out_shape=jax.ShapeDtypeStruct((Mp, Np), out_dtype),
        grid=grid,
        in_specs=[
            pl.BlockSpec((tm, tk), lambda i, j, k: (i, k)),   # x tile
            pl.BlockSpec((tk, tn), lambda i, j, k: (k, j)),   # |W|^T tile
            pl.BlockSpec((1, tn), lambda i, j, k: (0, j)),    # bias tile
        ],
        out_specs=pl.BlockSpec((tm, tn), lambda i, j, k: (i, j)),
        scratch_shapes=[pltpu.VMEM((tm, tn), jnp.float32)],
        compiler_params=pltpu.CompilerParams(
            dimension_semantics=("parallel", "parallel", "arbitrary"),
            vmem_limit_bytes=vmem_limit),
        cost_estimate=cost,
    )(x_p, wt_p, b2)

    return out_p[:B, :OUT]


def init_params(key, in_features, out_features):
    """Deterministic init mirroring PyTorch kaiming_uniform_(a=sqrt(5)) + bias uniform."""
    kw, kb = jax.random.split(key)
    fan_in = in_features
    w_bound = math.sqrt(6.0 / ((1.0 + 5.0) * fan_in))  # == 1/sqrt(fan_in)
    weight = jax.random.uniform(
        kw, (out_features, in_features), jnp.float32, -w_bound, w_bound)
    b_bound = 1.0 / math.sqrt(fan_in)
    bias = jax.random.uniform(kb, (out_features,), jnp.float32, -b_bound, b_bound)
    return weight, bias


if __name__ == "__main__":
    key = jax.random.PRNGKey(0)
    k_x, k_p, k_x2, k_p2 = jax.random.split(key, 4)

    # --- Pallas path (aligned, above the tiny-shape fallback threshold) ---
    B, IN, OUT = 128, 256, 256
    x = jax.random.normal(k_x, (B, IN), jnp.float32)
    weight, bias = init_params(k_p, IN, OUT)

    y = jax.block_until_ready(pos_w_linear(x, weight, bias))
    assert y.shape == (B, OUT)

    # Reference with the same bf16 MXU feed (f32 accumulation).
    y_ref_bf16 = jnp.dot(x.astype(jnp.bfloat16),
                         jnp.abs(weight).T.astype(jnp.bfloat16),
                         preferred_element_type=jnp.float32) + bias
    err = float(jnp.max(jnp.abs(y - y_ref_bf16)))
    assert jnp.allclose(y, y_ref_bf16, atol=1e-3, rtol=1e-3), err

    # Loose sanity check against the full-f32 reference (bf16 feed tolerance).
    y_ref_f32 = x @ jnp.abs(weight).T + bias
    assert jnp.allclose(y, y_ref_f32, atol=1e-1, rtol=1e-1)

    # --- Tiny-shape fallback path (plain XLA dot, full input-dtype semantics) ---
    b2, i2, o2 = 8, 32, 64
    x2 = jax.random.normal(k_x2, (b2, i2), jnp.float32)
    w2, bb2 = init_params(k_p2, i2, o2)
    y2 = jax.block_until_ready(pos_w_linear(x2, w2, bb2))
    assert jnp.allclose(y2, x2 @ jnp.abs(w2).T + bb2, atol=1e-4, rtol=1e-4)

    print("KERNEL_OK")
</pallas_src>

<mosaic_0001>
module attributes {stable_mosaic.version = 11 : i64} {
  func.func @_pos_w_linear_kernel(%arg0: i32, %arg1: i32, %arg2: i32, %arg3: memref<128x256xbf16, #tpu.memory_space<vmem>>, %arg4: memref<256x128xbf16, #tpu.memory_space<vmem>>, %arg5: memref<1x128xf32, #tpu.memory_space<vmem>>, %arg6: memref<128x128xf32, #tpu.memory_space<vmem>>, %arg7: memref<128x128xf32, #tpu.memory_space<vmem>>) attributes {dimension_semantics = [#tpu.dimension_semantics<parallel>, #tpu.dimension_semantics<parallel>, #tpu.dimension_semantics<arbitrary>], iteration_bounds = array<i64: 1, 2, 1>, scalar_prefetch = 0 : i64, scratch_operands = 1 : i64, tpu.core_type = #tpu.core_type<tc>, window_params = [{transform_indices = @transform_0, window_bounds = array<i64: 128, 256>}, {transform_indices = @transform_1, window_bounds = array<i64: 256, 128>}, {transform_indices = @transform_2, window_bounds = array<i64: 1, 128>}, {transform_indices = @transform_3, window_bounds = array<i64: 128, 128>}]} {
    %c0_i32 = arith.constant 0 : i32
    %0 = arith.cmpi eq, %arg2, %c0_i32 : i32
    %1 = arith.extui %0 : i1 to i32
    %c0_i32_0 = arith.constant 0 : i32
    %2 = arith.cmpi ne, %1, %c0_i32_0 : i32
    scf.if %2 {
      %c0_10 = arith.constant 0 : index
      %c0_11 = arith.constant 0 : index
      %12 = vector.load %arg5[%c0_10, %c0_11] : memref<1x128xf32, #tpu.memory_space<vmem>>, vector<1x128xf32>
      %13 = vector.shape_cast %12 : vector<1x128xf32> to vector<1x128xf32>
      %14 = vector.broadcast %13 : vector<1x128xf32> to vector<128x128xf32>
      %c0_12 = arith.constant 0 : index
      %c0_13 = arith.constant 0 : index
      %15 = vector.load %arg7[%c0_12, %c0_13] : memref<128x128xf32, #tpu.memory_space<vmem>>, vector<128x128xf32>
      tpu.vector_store %arg7[%c0_12, %c0_13], %14 {strides = array<i32>} : memref<128x128xf32, #tpu.memory_space<vmem>>, vector<128x128xf32>,
    } else {
    }
    %c0 = arith.constant 0 : index
    %c0_1 = arith.constant 0 : index
    %3 = vector.load %arg7[%c0, %c0_1] : memref<128x128xf32, #tpu.memory_space<vmem>>, vector<128x128xf32>
    %c0_2 = arith.constant 0 : index
    %c0_3 = arith.constant 0 : index
    %4 = vector.load %arg3[%c0_2, %c0_3] : memref<128x256xbf16, #tpu.memory_space<vmem>>, vector<128x256xbf16>
    %c0_4 = arith.constant 0 : index
    %c0_5 = arith.constant 0 : index
    %5 = vector.load %arg4[%c0_4, %c0_5] : memref<256x128xbf16, #tpu.memory_space<vmem>>, vector<256x128xbf16>
    %cst = arith.constant dense<0.000000e+00> : vector<128x128xf32>
    %6 = tpu.matmul %4, %5, %cst {dimension_numbers = #tpu.dot_dimension_numbers<[1], [0], [0], [1], [0, 0, 1, 1], [], []>} : vector<128x256xbf16>, vector<256x128xbf16>, vector<128x128xf32> -> vector<128x128xf32>
    %7 = arith.addf %3, %6 : vector<128x128xf32>
    %c0_6 = arith.constant 0 : index
    %c0_7 = arith.constant 0 : index
    %8 = vector.load %arg7[%c0_6, %c0_7] : memref<128x128xf32, #tpu.memory_space<vmem>>, vector<128x128xf32>
    tpu.vector_store %arg7[%c0_6, %c0_7], %7 {strides = array<i32>} : memref<128x128xf32, #tpu.memory_space<vmem>>, vector<128x128xf32>,
    %c0_i32_8 = arith.constant 0 : i32
    %9 = arith.cmpi eq, %arg2, %c0_i32_8 : i32
    %10 = arith.extui %9 : i1 to i32
    %c0_i32_9 = arith.constant 0 : i32
    %11 = arith.cmpi ne, %10, %c0_i32_9 : i32
    scf.if %11 {
      %c0_10 = arith.constant 0 : index
      %c0_11 = arith.constant 0 : index
      %12 = vector.load %arg7[%c0_10, %c0_11] : memref<128x128xf32, #tpu.memory_space<vmem>>, vector<128x128xf32>
      %c0_12 = arith.constant 0 : index
      %c0_13 = arith.constant 0 : index
      %13 = vector.load %arg6[%c0_12, %c0_13] : memref<128x128xf32, #tpu.memory_space<vmem>>, vector<128x128xf32>
      tpu.vector_store %arg6[%c0_12, %c0_13], %12 {strides = array<i32>} : memref<128x128xf32, #tpu.memory_space<vmem>>, vector<128x128xf32>,
    } else {
    }
    return
  }
  func.func @transform_0(%arg0: i32, %arg1: i32, %arg2: i32) -> (i32, i32) {
    %c0_i32 = arith.constant 0 : i32
    return %arg0, %arg2 : i32, i32
  }
  func.func @transform_1(%arg0: i32, %arg1: i32, %arg2: i32) -> (i32, i32) {
    %c0_i32 = arith.constant 0 : i32
    return %arg2, %arg1 : i32, i32
  }
  func.func @transform_2(%arg0: i32, %arg1: i32, %arg2: i32) -> (i32, i32) {
    %c0_i32 = arith.constant 0 : i32
    %c0_i32_0 = arith.constant 0 : i32
    return %c0_i32, %arg1 : i32, i32
  }
  func.func @transform_3(%arg0: i32, %arg1: i32, %arg2: i32) -> (i32, i32) {
    %c0_i32 = arith.constant 0 : i32
    return %arg0, %arg1 : i32, i32
  }
}

</mosaic_0001>

<bundles_post_ra>
// kernel: pos_w_linear.1
= control target key start
LH: loop header
LB: loop body
LE: loop exit
PB: predicated region body
PF: predicated region fallthrough
CT: control target
= control target key end

     0   :  { %8 = vsyncpa [#allocation5], 0  ;;  %s1610_s0 = inlined_call_operand.vmem [shape: bf16[128,256], index: 0, kind: input, shape index: {}]   ;;  %s1611_s1 = inlined_call_operand.vmem [shape: bf16[256,256], index: 1, kind: input, shape index: {}]   ;;  %s1612_s2 = inlined_call_operand.vmem [shape: f32[1,256], index: 2, kind: input, shape index: {}]   ;;  %s1613_s3 = inlined_call_operand.hbm [shape: f32[128,256], index: 3, kind: output, shape index: {}]  }
   0x1   :  { %10 = vsyncpa [#allocation5 + $0x1], 0  ;;  %s1307_s12 = smov 0   ;;  %s1309_s13 = smov 0  }
   0x2   :  { %s1311_s14 = smov 0   ;;  %s1313_s15 = smov 0  }
   0x3   :  { %s1315_s16 = smov 0   ;;  %s1317_s17 = smov 0  }
   0x4 LB: > { %s980_s18 = sadd.s32 4294967295, %s1281_s17   ;;  %s981_s19 = sadd.s32 4294967294, %s1281_s17   ;;  %s1281_s17 = sphi %s1317_s17, %s16_s17   ;;  %s1277_s16 = sphi %s1315_s16, %s1620_s16   ;;  %s1273_s15 = sphi %s1313_s15, %s1619_s15   ;;  %s1269_s14 = sphi %s1311_s14, %s1618_s14   ;;  %s1265_s13 = sphi %s1309_s13, %s1617_s13   ;;  %s1261_s12 = sphi %s1307_s12, %s1616_s12  }
   0x5   : > { %s31_s20 = sadd.s32 1, %s1277_s16  ;;  %s72_s21 = sadd.s32 1, %s1269_s14 }
   0x6   : > { %p33_p0 = scmp.ge.s32.totalorder %s31_s20, 2  ;;  %p79_p1 = scmp.ne.s32.totalorder %s1269_s14, %s1265_s13 }
   0x7   : > { %p80_p2 = scmp.eq.s32.totalorder %s1281_s17, 0  ;;  %p137_p3 = scmp.eq.s32.totalorder %s980_s18, 1 }
   0x8   : > { %s1622_s20 = smov (%p33_p0, %s31_s20), 0  ;;  %p142_p6 = scmp.ne.s32.totalorder %s1265_s13, %s1261_s12 }
   0x9   : > { %p81_p4 = por %p80_p2, %p79_p1  ;;  %p1346_p5 = por %p137_p3, %p79_p1 }
   0xa   : > { %s68_s23 = ssub.s32 %s1277_s16, %s1622_s20  ;;  %p143_p8 = scmp.eq.s32.totalorder %s981_s19, 1 }
   0xb   : > { %p70_p7 = scmp.eq.s32.totalorder %s68_s23, 0  ;;  %p984_p10 = scmp.ge.s32.totalorder %s1281_s17, 2 }
   0xc   : > { %p1357_p9 = por %p143_p8, %p142_p6 }
   0xd   : > { %s1355_s24 = scalar_select %p70_p7, %s1269_s14, %s72_s21  }
   0xe   : > { %174 = sbr.rel (%p984_p10) target bundleno = 44 (0x2c), region = 20 }
  0x13   : > { %177 = sbr.rel (!%p81_p4) target bundleno = 44 (0x2c), region = 24  ;;  %s179_s26 = sand.u32 (%p81_p4), 1, %s1269_s14  }
  0x14   : > { %s986_s27 = sshll.u32 (%p81_p4), %s1277_s16, 2  ;;  %s985_s28 = sshll.u32 (%p81_p4), %s179_s26, 7 }
  0x15   : > { %s1369_s4 = scalar_lea.vmem (%p81_p4), %s1611_s1, %s986_s27  ;;  %s1373_s5 = scalar_lea.vmem (%p81_p4), [#allocation3], %s985_s28 }
  0x16   : > { %v203_v0 = vld [vmem:[%s1369_s4] sm:$0xf] (%p81_p4)  ;;  %v205_v1 = vld [vmem:[%s1369_s4 + $0x8] sm:$0xf] (%p81_p4)  ;;  %v207_v2 = vld [vmem:[%s1369_s4 + $0x10] sm:$0xf] (%p81_p4) }
  0x17   : > { %204 = vst [vmem:[%s1373_s5] sm:$0xf] (%p81_p4), %v203_v0  ;;  %206 = vst [vmem:[%s1373_s5 + $0x4] sm:$0xf] (%p81_p4), %v205_v1  ;;  %v209_v3 = vld [vmem:[%s1369_s4 + $0x18] sm:$0xf] (%p81_p4) }
  0x18   : > { %v211_v4 = vld [vmem:[%s1369_s4 + $0x20] sm:$0xf]  ;;  %208 = vst [vmem:[%s1373_s5 + $0x8] sm:$0xf] %v207_v2  ;;  %210 = vst [vmem:[%s1373_s5 + $0xc] sm:$0xf] %v209_v3 }
  0x19   : > { %212 = vst [vmem:[%s1373_s5 + $0x10] sm:$0xf] %v211_v4  ;;  %v213_v5 = vld [vmem:[%s1369_s4 + $0x28] sm:$0xf]  ;;  %v215_v6 = vld [vmem:[%s1369_s4 + $0x30] sm:$0xf] }
  0x1a   : > { %v217_v7 = vld [vmem:[%s1369_s4 + $0x38] sm:$0xf]  ;;  %214 = vst [vmem:[%s1373_s5 + $0x14] sm:$0xf] %v213_v5  ;;  %216 = vst [vmem:[%s1373_s5 + $0x18] sm:$0xf] %v215_v6 }
  0x1b   : > { %218 = vst [vmem:[%s1373_s5 + $0x1c] sm:$0xf] %v217_v7  ;;  %v219_v8 = vld [vmem:[%s1369_s4 + $0x40] sm:$0xf]  ;;  %v221_v9 = vld [vmem:[%s1369_s4 + $0x48] sm:$0xf] }
  0x1c   : > { %v223_v10 = vld [vmem:[%s1369_s4 + $0x50] sm:$0xf]  ;;  %220 = vst [vmem:[%s1373_s5 + $0x20] sm:$0xf] %v219_v8  ;;  %222 = vst [vmem:[%s1373_s5 + $0x24] sm:$0xf] %v221_v9 }
  0x1d   : > { %224 = vst [vmem:[%s1373_s5 + $0x28] sm:$0xf] %v223_v10  ;;  %v225_v11 = vld [vmem:[%s1369_s4 + $0x58] sm:$0xf]  ;;  %v227_v12 = vld [vmem:[%s1369_s4 + $0x60] sm:$0xf] }
  0x1e   : > { %v229_v13 = vld [vmem:[%s1369_s4 + $0x68] sm:$0xf]  ;;  %226 = vst [vmem:[%s1373_s5 + $0x2c] sm:$0xf] %v225_v11  ;;  %228 = vst [vmem:[%s1373_s5 + $0x30] sm:$0xf] %v227_v12 }
  0x1f   : > { %230 = vst [vmem:[%s1373_s5 + $0x34] sm:$0xf] %v229_v13  ;;  %v231_v14 = vld [vmem:[%s1369_s4 + $0x70] sm:$0xf]  ;;  %v233_v15 = vld [vmem:[%s1369_s4 + $0x78] sm:$0xf] }
  0x20   : > { %v235_v16 = vld [vmem:[%s1369_s4 + $0x80] sm:$0xf]  ;;  %232 = vst [vmem:[%s1373_s5 + $0x38] sm:$0xf] %v231_v14  ;;  %234 = vst [vmem:[%s1373_s5 + $0x3c] sm:$0xf] %v233_v15 }
  0x21   : > { %236 = vst [vmem:[%s1373_s5 + $0x40] sm:$0xf] %v235_v16  ;;  %v237_v17 = vld [vmem:[%s1369_s4 + $0x88] sm:$0xf]  ;;  %v239_v18 = vld [vmem:[%s1369_s4 + $0x90] sm:$0xf] }
  0x22   : > { %v241_v19 = vld [vmem:[%s1369_s4 + $0x98] sm:$0xf]  ;;  %238 = vst [vmem:[%s1373_s5 + $0x44] sm:$0xf] %v237_v17  ;;  %240 = vst [vmem:[%s1373_s5 + $0x48] sm:$0xf] %v239_v18 }
  0x23   : > { %242 = vst [vmem:[%s1373_s5 + $0x4c] sm:$0xf] %v241_v19  ;;  %v243_v20 = vld [vmem:[%s1369_s4 + $0xa0] sm:$0xf]  ;;  %v245_v21 = vld [vmem:[%s1369_s4 + $0xa8] sm:$0xf] }
  0x24   : > { %v247_v22 = vld [vmem:[%s1369_s4 + $0xb0] sm:$0xf]  ;;  %244 = vst [vmem:[%s1373_s5 + $0x50] sm:$0xf] %v243_v20  ;;  %246 = vst [vmem:[%s1373_s5 + $0x54] sm:$0xf] %v245_v21 }
  0x25   : > { %248 = vst [vmem:[%s1373_s5 + $0x58] sm:$0xf] %v247_v22  ;;  %v249_v23 = vld [vmem:[%s1369_s4 + $0xb8] sm:$0xf]  ;;  %v251_v24 = vld [vmem:[%s1369_s4 + $0xc0] sm:$0xf] }
  0x26   : > { %v253_v25 = vld [vmem:[%s1369_s4 + $0xc8] sm:$0xf]  ;;  %250 = vst [vmem:[%s1373_s5 + $0x5c] sm:$0xf] %v249_v23  ;;  %252 = vst [vmem:[%s1373_s5 + $0x60] sm:$0xf] %v251_v24 }
  0x27   : > { %254 = vst [vmem:[%s1373_s5 + $0x64] sm:$0xf] %v253_v25  ;;  %v255_v26 = vld [vmem:[%s1369_s4 + $0xd0] sm:$0xf]  ;;  %v257_v27 = vld [vmem:[%s1369_s4 + $0xd8] sm:$0xf] }
  0x28   : > { %v259_v28 = vld [vmem:[%s1369_s4 + $0xe0] sm:$0xf]  ;;  %256 = vst [vmem:[%s1373_s5 + $0x68] sm:$0xf] %v255_v26  ;;  %258 = vst [vmem:[%s1373_s5 + $0x6c] sm:$0xf] %v257_v27 }
  0x29   : > { %260 = vst [vmem:[%s1373_s5 + $0x70] sm:$0xf] %v259_v28  ;;  %v261_v29 = vld [vmem:[%s1369_s4 + $0xe8] sm:$0xf]  ;;  %v263_v30 = vld [vmem:[%s1369_s4 + $0xf0] sm:$0xf] }
  0x2a   : > { %v265_v31 = vld [vmem:[%s1369_s4 + $0xf8] sm:$0xf]  ;;  %262 = vst [vmem:[%s1373_s5 + $0x74] sm:$0xf] %v261_v29  ;;  %264 = vst [vmem:[%s1373_s5 + $0x78] sm:$0xf] %v263_v30 }
  0x2b   : > { %266 = vst [vmem:[%s1373_s5 + $0x7c] sm:$0xf] %v265_v31 }
  0x2c PF: > { %p987_p11 = scmp.ge.s32.totalorder %s1281_s17, 1  ;;  %p359_p12 = scmp.lt.s32.totalorder %s1281_s17, 3 }
  0x2e   : > { %p360_p13 = pnand %p987_p11, %p359_p12 }
  0x2f   : > { %s366_s6 = sand.u32 (!%p360_p13), 1, %s1265_s13   ;;  %p415_p0 = scmp.lt.s32.totalorder (!%p360_p13), %s1273_s15, 1 }
  0x30   : > { %363 = sbr.rel (%p360_p13) target bundleno = 329 (0x149), region = 69  ;;  %s1442_s7 = sshll.u32 (!%p360_p13), %s366_s6, 7 }
  0x31   : > { %s1451_s18 = scalar_lea.vmem (!%p360_p13), [#allocation3], %s1442_s7  ;;  %s1521_s23 = scalar_lea.vmem (!%p360_p13), [#allocation4], %s1442_s7 }
  0x32   : > { %s1024_s7 = sshll.u32 (!%p360_p13), %s1273_s15, 7  ;;  %s867_s26 = sshll.u32 (!%p360_p13), %s1521_s23, 4  ;;  %s1556_s26 = int_to_ptr.vmem [resolvable:$true] %s867_s26 }
  0x33   : > { %s1554_s29 = scalar_lea.hbm (!%p360_p13), %s1613_s3, %s1024_s7  ;;  %s1205_s30 = scalar_lea.vmem (!%p360_p13), %s1556_s26, 2048 }
  0x34   : > { %p1206_p1 = scmp.ne.s32.totalorder (!%p360_p13), %s1556_s26, %s1205_s30  ;;  %s1283_s4 = smov (!%p360_p13), [#allocation4]  }
  0x35   : > { %v1183_v32 = vld [vmem:[%s1610_s0 + $0x4] ss:$8 sps:$4 sm:$0xff]   ;;  %v1165_v34 = vld [vmem:[%s1451_s18 + $0x78] sm:$0xff]   ;;  %v1167_v36 = vld [vmem:[%s1451_s18 + $0x70] sm:$0xff]   ;;  %s416_s11 = scalar_select %p415_p0, %s1273_s15, 1 }
  0x36   : > { %v1186_v33 = vld [vmem:[%s1610_s0 + $0x44] ss:$8 sps:$4 sm:$0xff]   ;;  %719 = vmatprep.mubr.bf16.mxu0 %v1183_v32  ;;  %v1166_v35 = vld [vmem:[%s1451_s18 + $0x38] sm:$0xff]   ;;  %1027 = vmatprep.subr.bf16.mxu0 %v1165_v34  ;;  %v1168_v37 = vld [vmem:[%s1451_s18 + $0x30] sm:$0xff]   ;;  %s1564_s15 = scalar_lea.sflag [#allocation5], %s366_s6  ;;  %p1207_p2 = pnand %p1206_p1, %p1346_p5 }
  0x37   : > { %751 = vmatprep.mubr.bf16.mxu1 %v1186_v33  ;;  %1091 = vmatprep.subr.bf16.mxu1 %v1165_v34  ;;  %v1169_v38 = vld [vmem:[%s1451_s18 + $0x68] sm:$0xff]   ;;  %v1171_v40 = vld [vmem:[%s1451_s18 + $0x60] sm:$0xff]   ;;  %v1173_v42 = vld [vmem:[%s1451_s18 + $0x58] sm:$0xff]   ;;  %s417_s21 = scalar_lea.vmem %s1612_s2, %s416_s11  ;;  %s1209_s5 = sshll.u32 %s1283_s4, 4  ;;  %s1210_s5 = int_to_ptr.vmem [resolvable:$false] %s1209_s5 }
  0x38   : > { %1028 = vmatpush3.bf16.msra.mxu0 %v1166_v35  ;;  %1099 = vmatpush3.bf16.msra.mxu1 %v1166_v35  ;;  %v1170_v39 = vld [vmem:[%s1451_s18 + $0x28] sm:$0xff]   ;;  %v1172_v41 = vld [vmem:[%s1451_s18 + $0x20] sm:$0xff]   ;;  %v1174_v43 = vld [vmem:[%s1451_s18 + $0x18] sm:$0xff]   ;;  %p1208_p3 = pneg %p1207_p2  ;;  %s1211_s8 = scalar_lea.vmem %s1210_s5, 4096 }
  0x39   : > { %1029 = vmatprep.subr.bf16.mxu0 %v1167_v36  ;;  %1092 = vmatprep.subr.bf16.mxu1 %v1167_v36  ;;  %v1175_v44 = vld [vmem:[%s1451_s18 + $0x50] sm:$0xff]   ;;  %v1177_v46 = vld [vmem:[%s1451_s18 + $0x48] sm:$0xff]   ;;  %v1179_v48 = vld [vmem:[%s1451_s18 + $0x40] sm:$0xff]   ;;  %p1212_p4 = scmp.lt.s32.totalorder %s1556_s26, %s1210_s5  ;;  %p1213_p6 = scmp.lt.s32.totalorder %s1211_s8, %s1205_s30 }
  0x3a   : > { %v1176_v45 = vld [vmem:[%s1451_s18 + $0x10] sm:$0xff]   ;;  %v1178_v47 = vld [vmem:[%s1451_s18 + $0x8] sm:$0xff]   ;;  %v1180_v49 = vld [vmem:[%s1451_s18] sm:$0xff]  }
  0x3b   : > { %v1181_v50 = vld [vmem:[%s1610_s0] ss:$8 sps:$4 sm:$0xff]   ;;  %v1187_v52 = vld [vmem:[%s1610_s0 + $0x14] ss:$8 sps:$4 sm:$0xff]   ;;  %v1191_v54 = vld [vmem:[%s1610_s0 + $0x10] ss:$8 sps:$4 sm:$0xff]   ;;  %p1214_p7 = por %p1213_p6, %p1212_p4 }
  0x3c   : > { %1030 = vmatpush3.bf16.msra.mxu0 %v1168_v37  ;;  %1100 = vmatpush3.bf16.msra.mxu1 %v1168_v37  ;;  %v1184_v51 = vld [vmem:[%s1610_s0 + $0x40] ss:$8 sps:$4 sm:$0xff]   ;;  %v1189_v53 = vld [vmem:[%s1610_s0 + $0x54] ss:$8 sps:$4 sm:$0xff]   ;;  %v1192_v55 = vld [vmem:[%s1610_s0 + $0x50] ss:$8 sps:$4 sm:$0xff]  }
  0x3d   : > { %1031 = vmatprep.subr.bf16.mxu0 %v1169_v38  ;;  %1093 = vmatprep.subr.bf16.mxu1 %v1169_v38  ;;  %v1193_v56 = vld [vmem:[%s1610_s0 + $0x24] ss:$8 sps:$4 sm:$0xff]   ;;  %v1197_v58 = vld [vmem:[%s1610_s0 + $0x20] ss:$8 sps:$4 sm:$0xff]   ;;  %v1199_v60 = vld [vmem:[%s1610_s0 + $0x34] ss:$8 sps:$4 sm:$0xff]   ;;  %p1215_p8 = pnand %p1214_p7, %p1208_p3 }
  0x3e   : > { %v1195_v57 = vld [vmem:[%s1610_s0 + $0x64] ss:$8 sps:$4 sm:$0xff]   ;;  %v1198_v59 = vld [vmem:[%s1610_s0 + $0x60] ss:$8 sps:$4 sm:$0xff]   ;;  %v1201_v61 = vld [vmem:[%s1610_s0 + $0x74] ss:$8 sps:$4 sm:$0xff]  }
  0x3f   : > { %v1203_v62 = vld [vmem:[%s1610_s0 + $0x30] ss:$8 sps:$4 sm:$0xff]   ;;  %v1516_v2 = vld [vmem:[%s417_s21] ss:$0 sm:$0xff] }
  0x40   : > { %1032 = vmatpush3.bf16.msra.mxu0 %v1170_v39  ;;  %1101 = vmatpush3.bf16.msra.mxu1 %v1170_v39  ;;  %v1204_v63 = vld [vmem:[%s1610_s0 + $0x70] ss:$8 sps:$4 sm:$0xff]  }
  0x41   : > { %1033 = vmatprep.subr.bf16.mxu0 %v1171_v40  ;;  %1094 = vmatprep.subr.bf16.mxu1 %v1171_v40 }
  0x44   : > { %1034 = vmatpush3.bf16.msra.mxu0 %v1172_v41  ;;  %1102 = vmatpush3.bf16.msra.mxu1 %v1172_v41 }
  0x45   : > { %1035 = vmatprep.subr.bf16.mxu0 %v1173_v42  ;;  %1095 = vmatprep.subr.bf16.mxu1 %v1173_v42 }
  0x48   : > { %1036 = vmatpush3.bf16.msra.mxu0 %v1174_v43  ;;  %1103 = vmatpush3.bf16.msra.mxu1 %v1174_v43 }
  0x49   : > { %1037 = vmatprep.subr.bf16.mxu0 %v1175_v44  ;;  %1096 = vmatprep.subr.bf16.mxu1 %v1175_v44 }
  0x4c   : > { %1038 = vmatpush3.bf16.msra.mxu0 %v1176_v45  ;;  %1104 = vmatpush3.bf16.msra.mxu1 %v1176_v45 }
  0x4d   : > { %1039 = vmatprep.subr.bf16.mxu0 %v1177_v46  ;;  %1097 = vmatprep.subr.bf16.mxu1 %v1177_v46 }
  0x50   : > { %1040 = vmatpush3.bf16.msra.mxu0 %v1178_v47  ;;  %1105 = vmatpush3.bf16.msra.mxu1 %v1178_v47 }
  0x51   : > { %1041 = vmatprep.subr.bf16.mxu0 %v1179_v48  ;;  %1098 = vmatprep.subr.bf16.mxu1 %v1179_v48 }
  0x54   : > { %1042 = vmatpush3.bf16.msra.mxu0 %v1180_v49  ;;  %1106 = vmatpush3.bf16.msra.mxu1 %v1180_v49 }
  0x57   : > { %720 = vmatmul.mubr.bf16.vlgmr.msra.gmra.mxu0 %v1181_v50  ;;  %752 = vmatmul.mubr.bf16.vlgmr.msra.gmra.mxu1 %v1184_v51 }
  0x58   : > { %727 = vmatprep.mubr.bf16.mxu0 %v1187_v52  ;;  %759 = vmatprep.mubr.bf16.mxu1 %v1189_v53 }
  0x5f   : > { %728 = vmatmul.mubr.bf16.gmra.mxu0 %v1191_v54  ;;  %760 = vmatmul.mubr.bf16.gmra.mxu1 %v1192_v55 }
  0x60   : > { %735 = vmatprep.mubr.bf16.mxu0 %v1193_v56  ;;  %767 = vmatprep.mubr.bf16.mxu1 %v1195_v57 }
  0x67   : > { %736 = vmatmul.mubr.bf16.gmra.mxu0 %v1197_v58  ;;  %768 = vmatmul.mubr.bf16.gmra.mxu1 %v1198_v59 }
  0x68   : > { %743 = vmatprep.mubr.bf16.mxu0 %v1199_v60  ;;  %775 = vmatprep.mubr.bf16.mxu1 %v1201_v61 }
  0x6f   : > { %744 = vmatmul.mubr.bf16.gmra.mxu0 %v1203_v62  ;;  %776 = vmatmul.mubr.bf16.gmra.mxu1 %v1204_v63 }
 0x117   : > { %v1043_v0 = vpop.f32.mrf.mxu0  ;;  %v1067_v1 = vpop.f32.mrf.mxu1 }
 0x119   : > { %v1044_v3 = vpop.f32.mrf.mxu0  ;;  %v1068_v4 = vpop.f32.mrf.mxu1 }
 0x11a   : > { %v1045_v5 = vadd.f32 %v1044_v3, %v1043_v0  ;;  %v1069_v6 = vadd.f32 %v1068_v4, %v1067_v1 }
 0x11b   : > { %v1046_v7 = vpop.f32.mrf.mxu0  ;;  %v1070_v8 = vpop.f32.mrf.mxu1 }
 0x11c   : > { %v784_v9 = vadd.f32 %v1045_v5, %v1516_v2  ;;  %v792_v10 = vadd.f32 %v1069_v6, %v1516_v2 }
 0x11d   : > { %v1047_v11 = vpop.f32.mrf.mxu0  ;;  %v1071_v12 = vpop.f32.mrf.mxu1 }
 0x11e   : > { %835 = vst [vmem:[%s1521_s23] sm:$0xff] %v784_v9  ;;  %843 = vst [vmem:[%s1521_s23 + $0x40] sm:$0xff] %v792_v10  ;;  %v1048_v13 = vadd.f32 %v1047_v11, %v1046_v7  ;;  %v1072_v14 = vadd.f32 %v1071_v12, %v1070_v8 }
 0x11f   : > { %v1049_v15 = vpop.f32.mrf.mxu0  ;;  %v1073_v16 = vpop.f32.mrf.mxu1 }
 0x120   : > { %v785_v17 = vadd.f32 %v1048_v13, %v1516_v2  ;;  %v793_v18 = vadd.f32 %v1072_v14, %v1516_v2 }
 0x121   : > { %v1050_v19 = vpop.f32.mrf.mxu0  ;;  %v1074_v20 = vpop.f32.mrf.mxu1 }
 0x122   : > { %836 = vst [vmem:[%s1521_s23 + $0x8] sm:$0xff] %v785_v17  ;;  %844 = vst [vmem:[%s1521_s23 + $0x48] sm:$0xff] %v793_v18  ;;  %v1051_v21 = vadd.f32 %v1050_v19, %v1049_v15  ;;  %v1075_v22 = vadd.f32 %v1074_v20, %v1073_v16 }
 0x123   : > { %v1052_v23 = vpop.f32.mrf.mxu0  ;;  %v1076_v24 = vpop.f32.mrf.mxu1 }
 0x124   : > { %v786_v25 = vadd.f32 %v1051_v21, %v1516_v2  ;;  %v794_v26 = vadd.f32 %v1075_v22, %v1516_v2 }
 0x125   : > { %v1053_v27 = vpop.f32.mrf.mxu0  ;;  %v1077_v28 = vpop.f32.mrf.mxu1 }
 0x126   : > { %837 = vst [vmem:[%s1521_s23 + $0x10] sm:$0xff] %v786_v25  ;;  %845 = vst [vmem:[%s1521_s23 + $0x50] sm:$0xff] %v794_v26  ;;  %v1054_v29 = vadd.f32 %v1053_v27, %v1052_v23  ;;  %v1078_v30 = vadd.f32 %v1077_v28, %v1076_v24 }
 0x127   : > { %v1055_v31 = vpop.f32.mrf.mxu0  ;;  %v1079_v32 = vpop.f32.mrf.mxu1 }
 0x128   : > { %v787_v33 = vadd.f32 %v1054_v29, %v1516_v2  ;;  %v795_v34 = vadd.f32 %v1078_v30, %v1516_v2 }
 0x129   : > { %v1056_v35 = vpop.f32.mrf.mxu0  ;;  %v1080_v36 = vpop.f32.mrf.mxu1 }
 0x12a   : > { %838 = vst [vmem:[%s1521_s23 + $0x18] sm:$0xff] %v787_v33  ;;  %846 = vst [vmem:[%s1521_s23 + $0x58] sm:$0xff] %v795_v34  ;;  %v1057_v37 = vadd.f32 %v1056_v35, %v1055_v31  ;;  %v1081_v38 = vadd.f32 %v1080_v36, %v1079_v32 }
 0x12b   : > { %v1058_v39 = vpop.f32.mrf.mxu0  ;;  %v1082_v40 = vpop.f32.mrf.mxu1 }
 0x12c   : > { %v788_v41 = vadd.f32 %v1057_v37, %v1516_v2  ;;  %v796_v42 = vadd.f32 %v1081_v38, %v1516_v2 }
 0x12d   : > { %v1059_v43 = vpop.f32.mrf.mxu0  ;;  %v1083_v44 = vpop.f32.mrf.mxu1 }
 0x12e   : > { %839 = vst [vmem:[%s1521_s23 + $0x20] sm:$0xff] %v788_v41  ;;  %847 = vst [vmem:[%s1521_s23 + $0x60] sm:$0xff] %v796_v42  ;;  %v1060_v45 = vadd.f32 %v1059_v43, %v1058_v39  ;;  %v1084_v46 = vadd.f32 %v1083_v44, %v1082_v40 }
 0x12f   : > { %v1061_v47 = vpop.f32.mrf.mxu0  ;;  %v1085_v48 = vpop.f32.mrf.mxu1 }
 0x130   : > { %v789_v49 = vadd.f32 %v1060_v45, %v1516_v2  ;;  %v797_v50 = vadd.f32 %v1084_v46, %v1516_v2 }
 0x131   : > { %v1062_v51 = vpop.f32.mrf.mxu0  ;;  %v1086_v52 = vpop.f32.mrf.mxu1 }
 0x132   : > { %840 = vst [vmem:[%s1521_s23 + $0x28] sm:$0xff] %v789_v49  ;;  %848 = vst [vmem:[%s1521_s23 + $0x68] sm:$0xff] %v797_v50  ;;  %v1063_v53 = vadd.f32 %v1062_v51, %v1061_v47  ;;  %v1087_v54 = vadd.f32 %v1086_v52, %v1085_v48 }
 0x133   : > { %v1064_v55 = vpop.f32.mrf.mxu0  ;;  %v1088_v56 = vpop.f32.mrf.mxu1 }
 0x134   : > { %v790_v57 = vadd.f32 %v1063_v53, %v1516_v2  ;;  %v798_v58 = vadd.f32 %v1087_v54, %v1516_v2 }
 0x135   : > { %v1065_v59 = vpop.f32.mrf.mxu0  ;;  %v1089_v60 = vpop.f32.mrf.mxu1 }
 0x136   : > { %841 = vst [vmem:[%s1521_s23 + $0x30] sm:$0xff] %v790_v57  ;;  %849 = vst [vmem:[%s1521_s23 + $0x70] sm:$0xff] %v798_v58  ;;  %v1066_v61 = vadd.f32 %v1065_v59, %v1064_v55  ;;  %v1090_v62 = vadd.f32 %v1089_v60, %v1088_v56 }
 0x138   : > { %v791_v63 = vadd.f32 %v1066_v61, %v1516_v2  ;;  %v799_v0 = vadd.f32 %v1090_v62, %v1516_v2 }
 0x13a   : > { %842 = vst [vmem:[%s1521_s23 + $0x38] sm:$0xff] %v791_v63  ;;  %850 = vst [vmem:[%s1521_s23 + $0x78] sm:$0xff] %v799_v0 }
 0x13b   : > { %1218 = shalt.err (!%p1215_p8)
}
 0x13c   : > { %s1219_s6 = scalar_lea.hbm %s1554_s29, 2048  ;;  %s1223_s11 = scalar_lea.hbm %s1613_s3, 4096 }
 0x13d   : > { %p1220_p11 = scmp.ne.s32.totalorder %s1554_s29, %s1219_s6  ;;  %p1224_p0 = scmp.lt.s32.totalorder %s1554_s29, %s1613_s3 }
 0x13e   : > { %p1225_p1 = scmp.lt.s32.totalorder %s1223_s11, %s1219_s6 }
 0x13f   : > { %p1221_p12 = pnand %p1220_p11, %p1346_p5 }
 0x140   : > { %p1226_p2 = por %p1225_p1, %p1224_p0 }
 0x141   : > { %p1222_p13 = pneg %p1221_p12 }
 0x143   : > { %p1227_p3 = pnand %p1226_p2, %p1222_p13 }
 0x145   : > { %1230 = shalt.err (!%p1227_p3)
}
 0x146   : > { %s1284_s21 = smov 128   ;;  %s1285_s23 = smov 256  }
 0x147   : > { %s1286_s7 = smov 8  }
 0x148   : > { %1107 = dma.vmem_to_hbm [thread:$0]  (%p1346_p5), %s1556_s26, 2048, %s1554_s29, %s1564_s15, %s1284_s21, %s1285_s23, %s1286_s7  }
 0x149 PF: > { %s882_s27 = sand.u32 1, %s1261_s12   ;;  %p1110_p4 = pnand %p984_p10, %p1357_p9 }
 0x14a   : > { %s883_s28 = scalar_lea.sflag [#allocation5], %s882_s27 }
 0x14b   : > { %p1111_p6 = pneg %p1110_p4 }
 0x14d   : > { %1256 = dma.done.wait (%p1111_p6), %s883_s28, 2048  }
 0x14e   : > { %1258 = vsyncadd (%p1111_p6), %s883_s28, 4294965248  ;;  %s16_s17 = sadd.s32 1, %s1281_s17   ;;  %s1616_s12 = smov %s1265_s13 }
 0x14f   : > { %p13_p7 = scmp.ge.s32.totalorder %s16_s17, 4   ;;  %s1617_s13 = smov %s1269_s14 }
 0x150   : > { %s1618_s14 = smov %s1355_s24  ;;  %s1619_s15 = smov %s1277_s16 }
 0x151   : > { %s1620_s16 = smov %s1622_s20  ;;  %15 = sbr.rel (!%p13_p7) target bundleno = 4 (0x4), region = 127 }
 0x156   :  { %888 = vsyncpa [#allocation5], 1 }
 0x157   :  { %890 = vsyncpa [#allocation5 + $0x1], 1 }

</bundles_post_ra>
